<compile_context>
chip_gen: v7x
topology: tpu7x:2x2x1
jax: 0.10.0
libtpu: 0.0.40
codegen_flags: <defaults>
</compile_context>

<pallas_src>
import functools

import jax
import jax.numpy as jnp
from jax.experimental import pallas as pl
from jax.experimental.pallas import tpu as pltpu

LANE = 128


def _round_up(v, m):
    return (v + m - 1) // m * m


# ----------------------------------------------------------------------------
# Fused kernel: all GCN layers + masked log_softmax in one grid point.
# ----------------------------------------------------------------------------
def _fused_gcn_kernel(a_ref, x_ref, *rest, num_layers, out_classes):
    w_refs = rest[:num_layers]
    o_ref = rest[num_layers]

    a = a_ref[...]            # bf16 [N, N]
    h = x_ref[...]            # bf16 [N, F_pad]

    logits = None
    for li in range(num_layers):
        w = w_refs[li][...]                                   # bf16
        # feature transform (computed once per layer), f32 accumulate
        xw = jnp.dot(h, w, preferred_element_type=jnp.float32)
        # neighbourhood aggregation, bf16 operands, f32 accumulate
        agg = jnp.dot(a, xw.astype(a.dtype),
                      preferred_element_type=jnp.float32)
        if li < num_layers - 1:
            h = jnp.maximum(agg, 0.0).astype(a.dtype)         # ReLU, back to bf16
        else:
            logits = agg                                      # f32 [N, C_pad]

    # log_softmax over the real (un-padded) class columns; padded columns are
    # masked to a huge negative so they contribute exp(.) == 0.
    col = jax.lax.broadcasted_iota(jnp.int32, logits.shape, dimension=1)
    logits = jnp.where(col < out_classes, logits, jnp.float32(-1e30))
    m = jnp.max(logits, axis=-1, keepdims=True)
    e = jnp.exp(logits - m)
    lse = jnp.log(jnp.sum(e, axis=-1, keepdims=True))
    o_ref[...] = (logits - m - lse).astype(o_ref.dtype)


def net_forward(a_hat, x, weights, dropout=0.5):
    """Mirrors Net.forward in eval mode (dropout is identity)."""
    n = a_hat.shape[0]
    num_layers = len(weights)
    out_feats = weights[-1].shape[1]

    # lane-dense (multiple-of-128) padding for every feature / class dim
    def pad2(arr, rows_to, cols_to):
        r, c = arr.shape
        return jnp.pad(arr, ((0, rows_to - r), (0, cols_to - c)))

    row_pads = [_round_up(w.shape[0], LANE) for w in weights]
    col_pads = [_round_up(w.shape[1], LANE) for w in weights]
    c_pad = col_pads[-1]

    a_p = a_hat.astype(jnp.bfloat16)
    x_p = pad2(x, n, row_pads[0]).astype(jnp.bfloat16)
    w_p = [pad2(w, row_pads[i], col_pads[i]).astype(jnp.bfloat16)
           for i, w in enumerate(weights)]

    kernel = functools.partial(
        _fused_gcn_kernel, num_layers=num_layers, out_classes=out_feats)

    in_specs = [pl.BlockSpec((n, n), lambda i: (0, 0)),
                pl.BlockSpec((n, row_pads[0]), lambda i: (0, 0))]
    for wi in w_p:
        in_specs.append(pl.BlockSpec(wi.shape, lambda i: (0, 0)))

    out_p = pl.pallas_call(
        kernel,
        out_shape=jax.ShapeDtypeStruct((n, c_pad), jnp.float32),
        grid_spec=pltpu.PrefetchScalarGridSpec(
            num_scalar_prefetch=0,
            grid=(1,),
            in_specs=in_specs,
            out_specs=pl.BlockSpec((n, c_pad), lambda i: (0, 0)),
        ),
        compiler_params=pltpu.CompilerParams(
            dimension_semantics=("arbitrary",)),
    )(a_p, x_p, *w_p)

    return out_p[:, :out_feats]


# ----------------------------------------------------------------------------
# Parameter / graph construction (deterministic)
# ----------------------------------------------------------------------------
def init_params(key, in_feats, hidden_feats, out_feats, num_layers):
    dims = [in_feats] + [hidden_feats] * (num_layers - 1) + [out_feats]
    weights = []
    for i in range(num_layers):
        key, sub = jax.random.split(key)
        fan_in, fan_out = dims[i], dims[i + 1]
        scale = jnp.sqrt(6.0 / (fan_in + fan_out))
        weights.append(
            jax.random.uniform(sub, (fan_in, fan_out), jnp.float32,
                               minval=-scale, maxval=scale))
    return weights


def build_normalized_adjacency(key, n, avg_degree=4):
    """Dense  D^-1/2 (A + I) D^-1/2  for a random undirected graph."""
    p = avg_degree / n
    upper = (jax.random.uniform(key, (n, n)) < p).astype(jnp.float32)
    upper = jnp.triu(upper, k=1)
    adj = upper + upper.T + jnp.eye(n, dtype=jnp.float32)  # self-loops
    deg = jnp.sum(adj, axis=1)
    d_inv_sqrt = 1.0 / jnp.sqrt(deg)
    return adj * d_inv_sqrt[:, None] * d_inv_sqrt[None, :]


# ----------------------------------------------------------------------------
if __name__ == "__main__":
    key = jax.random.PRNGKey(0)
    k_feat, k_adj, k_w = jax.random.split(key, 3)

    # small synthetic problem
    N = 64            # number of graph nodes
    IN_FEATS = 16
    HIDDEN_FEATS = 32
    OUT_FEATS = 8
    NUM_LAYERS = 3    # conv1 + 1 hidden GCNConv + conv2
    DROPOUT = 0.5     # identity in eval mode

    x = jax.random.normal(k_feat, (N, IN_FEATS), jnp.float32)
    a_hat = build_normalized_adjacency(k_adj, N)
    weights = init_params(k_w, IN_FEATS, HIDDEN_FEATS, OUT_FEATS, NUM_LAYERS)

    out = net_forward(a_hat, x, weights, dropout=DROPOUT)
    out = jax.block_until_ready(out)

    # sanity: correct shape, finite, and rows sum (in prob space) to 1
    assert out.shape == (N, OUT_FEATS)
    assert bool(jnp.all(jnp.isfinite(out)))
    assert jnp.allclose(jnp.sum(jnp.exp(out), axis=1), 1.0, atol=1e-3)

    print("KERNEL_OK")
</pallas_src>

<mosaic_0001>
module attributes {stable_mosaic.version = 11 : i64} {
  func.func @_fused_gcn_kernel(%arg0: i32, %arg1: memref<64x64xbf16, #tpu.memory_space<vmem>>, %arg2: memref<64x128xbf16, #tpu.memory_space<vmem>>, %arg3: memref<128x128xbf16, #tpu.memory_space<vmem>>, %arg4: memref<128x128xbf16, #tpu.memory_space<vmem>>, %arg5: memref<128x128xbf16, #tpu.memory_space<vmem>>, %arg6: memref<64x128xf32, #tpu.memory_space<vmem>>) attributes {dimension_semantics = [#tpu.dimension_semantics<arbitrary>], iteration_bounds = array<i64: 1>, scalar_prefetch = 0 : i64, scratch_operands = 0 : i64, tpu.core_type = #tpu.core_type<tc>, window_params = [{pipeline_mode = #tpu.pipeline_mode<synchronous>, transform_indices = @transform_0, window_bounds = array<i64: 64, 64>}, {pipeline_mode = #tpu.pipeline_mode<synchronous>, transform_indices = @transform_1, window_bounds = array<i64: 64, 128>}, {pipeline_mode = #tpu.pipeline_mode<synchronous>, transform_indices = @transform_2, window_bounds = array<i64: 128, 128>}, {pipeline_mode = #tpu.pipeline_mode<synchronous>, transform_indices = @transform_3, window_bounds = array<i64: 128, 128>}, {pipeline_mode = #tpu.pipeline_mode<synchronous>, transform_indices = @transform_4, window_bounds = array<i64: 128, 128>}, {pipeline_mode = #tpu.pipeline_mode<synchronous>, transform_indices = @transform_5, window_bounds = array<i64: 64, 128>}]} {
    %c0 = arith.constant 0 : index
    %c0_0 = arith.constant 0 : index
    %0 = vector.load %arg1[%c0, %c0_0] : memref<64x64xbf16, #tpu.memory_space<vmem>>, vector<64x64xbf16>
    %c0_1 = arith.constant 0 : index
    %c0_2 = arith.constant 0 : index
    %1 = vector.load %arg2[%c0_1, %c0_2] : memref<64x128xbf16, #tpu.memory_space<vmem>>, vector<64x128xbf16>
    %c0_3 = arith.constant 0 : index
    %c0_4 = arith.constant 0 : index
    %2 = vector.load %arg3[%c0_3, %c0_4] : memref<128x128xbf16, #tpu.memory_space<vmem>>, vector<128x128xbf16>
    %cst = arith.constant dense<0.000000e+00> : vector<64x128xf32>
    %3 = tpu.matmul %1, %2, %cst {dimension_numbers = #tpu.dot_dimension_numbers<[1], [0], [0], [1], [0, 0, 1, 1], [], []>} : vector<64x128xbf16>, vector<128x128xbf16>, vector<64x128xf32> -> vector<64x128xf32>
    %4 = arith.truncf %3 : vector<64x128xf32> to vector<64x128xbf16>
    %cst_5 = arith.constant dense<0.000000e+00> : vector<64x128xf32>
    %5 = tpu.matmul %0, %4, %cst_5 {dimension_numbers = #tpu.dot_dimension_numbers<[1], [0], [0], [1], [0, 0, 1, 1], [], []>} : vector<64x64xbf16>, vector<64x128xbf16>, vector<64x128xf32> -> vector<64x128xf32>
    %cst_6 = arith.constant 0.000000e+00 : f32
    %6 = vector.broadcast %cst_6 : f32 to vector<64x128xf32>
    %7 = arith.maximumf %5, %6 : vector<64x128xf32>
    %8 = arith.truncf %7 : vector<64x128xf32> to vector<64x128xbf16>
    %c0_7 = arith.constant 0 : index
    %c0_8 = arith.constant 0 : index
    %9 = vector.load %arg4[%c0_7, %c0_8] : memref<128x128xbf16, #tpu.memory_space<vmem>>, vector<128x128xbf16>
    %cst_9 = arith.constant dense<0.000000e+00> : vector<64x128xf32>
    %10 = tpu.matmul %8, %9, %cst_9 {dimension_numbers = #tpu.dot_dimension_numbers<[1], [0], [0], [1], [0, 0, 1, 1], [], []>} : vector<64x128xbf16>, vector<128x128xbf16>, vector<64x128xf32> -> vector<64x128xf32>
    %11 = arith.truncf %10 : vector<64x128xf32> to vector<64x128xbf16>
    %cst_10 = arith.constant dense<0.000000e+00> : vector<64x128xf32>
    %12 = tpu.matmul %0, %11, %cst_10 {dimension_numbers = #tpu.dot_dimension_numbers<[1], [0], [0], [1], [0, 0, 1, 1], [], []>} : vector<64x64xbf16>, vector<64x128xbf16>, vector<64x128xf32> -> vector<64x128xf32>
    %cst_11 = arith.constant 0.000000e+00 : f32
    %13 = vector.broadcast %cst_11 : f32 to vector<64x128xf32>
    %14 = arith.maximumf %12, %13 : vector<64x128xf32>
    %15 = arith.truncf %14 : vector<64x128xf32> to vector<64x128xbf16>
    %c0_12 = arith.constant 0 : index
    %c0_13 = arith.constant 0 : index
    %16 = vector.load %arg5[%c0_12, %c0_13] : memref<128x128xbf16, #tpu.memory_space<vmem>>, vector<128x128xbf16>
    %cst_14 = arith.constant dense<0.000000e+00> : vector<64x128xf32>
    %17 = tpu.matmul %15, %16, %cst_14 {dimension_numbers = #tpu.dot_dimension_numbers<[1], [0], [0], [1], [0, 0, 1, 1], [], []>} : vector<64x128xbf16>, vector<128x128xbf16>, vector<64x128xf32> -> vector<64x128xf32>
    %18 = arith.truncf %17 : vector<64x128xf32> to vector<64x128xbf16>
    %cst_15 = arith.constant dense<0.000000e+00> : vector<64x128xf32>
    %19 = tpu.matmul %0, %18, %cst_15 {dimension_numbers = #tpu.dot_dimension_numbers<[1], [0], [0], [1], [0, 0, 1, 1], [], []>} : vector<64x64xbf16>, vector<64x128xbf16>, vector<64x128xf32> -> vector<64x128xf32>
    %20 = tpu.iota {dimensions = array<i32: 1>} : vector<64x128xi32>
    %c8_i32 = arith.constant 8 : i32
    %21 = vector.broadcast %c8_i32 : i32 to vector<64x128xi32>
    %22 = arith.cmpi slt, %20, %21 : vector<64x128xi32>
    %cst_16 = arith.constant -1.000000e+30 : f32
    %23 = vector.broadcast %cst_16 : f32 to vector<64x128xf32>
    %24 = arith.select %22, %19, %23 : vector<64x128xi1>, vector<64x128xf32>
    %cst_17 = arith.constant dense<0xFF800000> : vector<64xf32>
    %25 = vector.multi_reduction <maximumf>, %24, %cst_17 [1] : vector<64x128xf32> to vector<64xf32>
    %26 = vector.shape_cast %25 : vector<64xf32> to vector<64x1xf32>
    %27 = vector.broadcast %26 : vector<64x1xf32> to vector<64x128xf32>
    %28 = arith.subf %24, %27 : vector<64x128xf32>
    %29 = math.exp %28 : vector<64x128xf32>
    %cst_18 = arith.constant dense<0.000000e+00> : vector<64xf32>
    %30 = vector.multi_reduction <add>, %29, %cst_18 [1] : vector<64x128xf32> to vector<64xf32>
    %31 = vector.shape_cast %30 : vector<64xf32> to vector<64x1xf32>
    %32 = math.log %31 : vector<64x1xf32>
    %33 = vector.broadcast %26 : vector<64x1xf32> to vector<64x128xf32>
    %34 = arith.subf %24, %33 : vector<64x128xf32>
    %35 = vector.broadcast %32 : vector<64x1xf32> to vector<64x128xf32>
    %36 = arith.subf %34, %35 : vector<64x128xf32>
    %c0_19 = arith.constant 0 : index
    %c0_20 = arith.constant 0 : index
    %37 = vector.load %arg6[%c0_19, %c0_20] : memref<64x128xf32, #tpu.memory_space<vmem>>, vector<64x128xf32>
    tpu.vector_store %arg6[%c0_19, %c0_20], %36 {strides = array<i32>} : memref<64x128xf32, #tpu.memory_space<vmem>>, vector<64x128xf32>,
    return
  }
  func.func @transform_0(%arg0: i32) -> (i32, i32) {
    %c0_i32 = arith.constant 0 : i32
    %c0_i32_0 = arith.constant 0 : i32
    %c0_i32_1 = arith.constant 0 : i32
    return %c0_i32, %c0_i32_0 : i32, i32
  }
  func.func @transform_1(%arg0: i32) -> (i32, i32) {
    %c0_i32 = arith.constant 0 : i32
    %c0_i32_0 = arith.constant 0 : i32
    %c0_i32_1 = arith.constant 0 : i32
    return %c0_i32, %c0_i32_0 : i32, i32
  }
  func.func @transform_2(%arg0: i32) -> (i32, i32) {
    %c0_i32 = arith.constant 0 : i32
    %c0_i32_0 = arith.constant 0 : i32
    %c0_i32_1 = arith.constant 0 : i32
    return %c0_i32, %c0_i32_0 : i32, i32
  }
  func.func @transform_3(%arg0: i32) -> (i32, i32) {
    %c0_i32 = arith.constant 0 : i32
    %c0_i32_0 = arith.constant 0 : i32
    %c0_i32_1 = arith.constant 0 : i32
    return %c0_i32, %c0_i32_0 : i32, i32
  }
  func.func @transform_4(%arg0: i32) -> (i32, i32) {
    %c0_i32 = arith.constant 0 : i32
    %c0_i32_0 = arith.constant 0 : i32
    %c0_i32_1 = arith.constant 0 : i32
    return %c0_i32, %c0_i32_0 : i32, i32
  }
  func.func @transform_5(%arg0: i32) -> (i32, i32) {
    %c0_i32 = arith.constant 0 : i32
    %c0_i32_0 = arith.constant 0 : i32
    %c0_i32_1 = arith.constant 0 : i32
    return %c0_i32, %c0_i32_0 : i32, i32
  }
}

</mosaic_0001>

<bundles_post_ra>
// kernel: tpu_custom_call.1
= control target key start
LH: loop header
LB: loop body
LE: loop exit
PB: predicated region body
PF: predicated region fallthrough
CT: control target
= control target key end

     0   :  { %10 = vsyncpa [#allocation3], 0  ;;  %s1550_s0 = inlined_call_operand.hbm [shape: bf16[64,64], index: 0, kind: input, shape index: {}]   ;;  %s1551_s1 = inlined_call_operand.hbm [shape: bf16[64,128], index: 1, kind: input, shape index: {}]   ;;  %s1552_s2 = inlined_call_operand.hbm [shape: bf16[128,128], index: 2, kind: input, shape index: {}]   ;;  %s1553_s3 = inlined_call_operand.hbm [shape: bf16[128,128], index: 3, kind: input, shape index: {}]   ;;  %s1554_s4 = inlined_call_operand.hbm [shape: bf16[128,128], index: 4, kind: input, shape index: {}]   ;;  %s1555_s5 = inlined_call_operand.hbm [shape: f32[64,128], index: 5, kind: output, shape index: {}]  }
   0x1   :  { %11 = vsyncpa [#allocation6], 0 }
   0x2   :  { %12 = vsyncpa [#allocation9], 0 }
   0x3   :  { %13 = vsyncpa [#allocation4], 0  ;;  %s1337_s18 = smov [#allocation5]   ;;  %s1338_s20 = smov [#allocation8]  }
   0x4   :  { %s31_s19 = sshll.u32 %s1337_s18, 4  ;;  %s55_s21 = sshll.u32 %s1338_s20, 4  ;;  %s32_s19 = int_to_ptr.vmem [resolvable:$true] %s31_s19  ;;  %s1377_s21 = int_to_ptr.vmem [resolvable:$true] %s55_s21 }
   0x5   :  { %s1197_s24 = scalar_lea.hbm %s1551_s1, 512 }
   0x6   :  { %p1198_p0 = scmp.ne.s32.totalorder %s1551_s1, %s1197_s24  ;;  %p1201_p1 = scmp.lt.u32.totalorder %s1197_s24, %s1551_s1 }
   0x8   :  { %p1203_p2 = pnand %p1201_p1, %p1198_p0 }
   0xa   :  { %1206 = shalt.err (!%p1203_p2)
}
   0xb   :  { %s1207_s29 = scalar_lea.vmem %s32_s19, 512  ;;  %p1212_p4 = scmp.lt.s32.totalorder %s32_s19, %s32_s19 }
   0xc   :  { %p1208_p3 = scmp.ne.s32.totalorder %s32_s19, %s1207_s29  ;;  %p1213_p5 = scmp.lt.s32.totalorder %s1207_s29, %s1207_s29 }
   0xe   :  { %p1214_p6 = por %p1213_p5, %p1212_p4 }
  0x10   :  { %p1215_p7 = pnand %p1214_p6, %p1208_p3 }
  0x12   :  { %1218 = shalt.err (!%p1215_p7)
}
  0x13   :  { %s1339_s30 = smov 64   ;;  %s1340_s6 = smov 4  }
  0x14   :  { %37 = dma.hbm_to_vmem [thread:$0]  %s1551_s1, 512, %s32_s19, [#allocation6], %s1339_s30, %s1339_s30, %s1340_s6  }
  0x15   :  { %s1219_s11 = scalar_lea.hbm %s1553_s3, 1024 }
  0x16   :  { %p1220_p8 = scmp.ne.s32.totalorder %s1553_s3, %s1219_s11  ;;  %p1223_p9 = scmp.lt.u32.totalorder %s1219_s11, %s1553_s3 }
  0x18   :  { %p1225_p10 = pnand %p1223_p9, %p1220_p8 }
  0x1a   :  { %1228 = shalt.err (!%p1225_p10)
}
  0x1b   :  { %s1229_s16 = scalar_lea.vmem %s1377_s21, 1024  ;;  %p1234_p12 = scmp.lt.s32.totalorder %s1377_s21, %s1377_s21 }
  0x1c   :  { %p1230_p11 = scmp.ne.s32.totalorder %s1377_s21, %s1229_s16  ;;  %p1235_p13 = scmp.lt.s32.totalorder %s1229_s16, %s1229_s16 }
  0x1e   :  { %p1236_p0 = por %p1235_p13, %p1234_p12 }
  0x20   :  { %p1237_p1 = pnand %p1236_p0, %p1230_p11 }
  0x22   :  { %1240 = shalt.err (!%p1237_p1)
}
  0x23   :  { %61 = dma.hbm_to_vmem [thread:$0]  %s1553_s3, 1024, %s1377_s21, [#allocation9], %s1339_s30, %s1339_s30, %s1340_s6  }
  0x24   :  { %s1341_s18 = smov [#allocation2]   ;;  %s1342_s20 = smov [#allocation7]  }
  0x25   :  { %s19_s19 = sshll.u32 %s1341_s18, 4  ;;  %s43_s22 = sshll.u32 %s1342_s20, 4  ;;  %s20_s19 = int_to_ptr.vmem [resolvable:$true] %s19_s19  ;;  %s1414_s22 = int_to_ptr.vmem [resolvable:$true] %s43_s22 }
  0x26   :  { %s1241_s25 = scalar_lea.hbm %s1550_s0, 512 }
  0x27   :  { %p1242_p2 = scmp.ne.s32.totalorder %s1550_s0, %s1241_s25  ;;  %p1245_p3 = scmp.lt.u32.totalorder %s1241_s25, %s1550_s0 }
  0x29   :  { %p1247_p4 = pnand %p1245_p3, %p1242_p2 }
  0x2b   :  { %1250 = shalt.err (!%p1247_p4)
}
  0x2c   :  { %s1251_s3 = scalar_lea.vmem %s20_s19, 512  ;;  %p1256_p6 = scmp.lt.s32.totalorder %s20_s19, %s20_s19 }
  0x2d   :  { %p1252_p5 = scmp.ne.s32.totalorder %s20_s19, %s1251_s3  ;;  %p1257_p7 = scmp.lt.s32.totalorder %s1251_s3, %s1251_s3 }
  0x2f   :  { %p1258_p8 = por %p1257_p7, %p1256_p6 }
  0x31   :  { %p1259_p9 = pnand %p1258_p8, %p1252_p5 }
  0x33   :  { %1262 = shalt.err (!%p1259_p9)
}
  0x34   :  { %25 = dma.hbm_to_vmem [thread:$0]  %s1550_s0, 512, %s20_s19, [#allocation3], %s1339_s30, %s1339_s30, %s1340_s6  }
  0x35   :  { %s1263_s10 = scalar_lea.hbm %s1552_s2, 1024 }
  0x36   :  { %p1264_p10 = scmp.ne.s32.totalorder %s1552_s2, %s1263_s10  ;;  %p1267_p11 = scmp.lt.u32.totalorder %s1263_s10, %s1552_s2 }
  0x38   :  { %p1269_p12 = pnand %p1267_p11, %p1264_p10 }
  0x3a   :  { %1272 = shalt.err (!%p1269_p12)
}
  0x3b   :  { %s1273_s15 = scalar_lea.vmem %s1414_s22, 1024  ;;  %p1278_p0 = scmp.lt.s32.totalorder %s1414_s22, %s1414_s22 }
  0x3c   :  { %p1274_p13 = scmp.ne.s32.totalorder %s1414_s22, %s1273_s15  ;;  %p1279_p1 = scmp.lt.s32.totalorder %s1273_s15, %s1273_s15 }
  0x3e   :  { %p1280_p2 = por %p1279_p1, %p1278_p0 }
  0x40   :  { %p1281_p3 = pnand %p1280_p2, %p1274_p13 }
  0x42   :  { %1284 = shalt.err (!%p1281_p3)
}
  0x43   :  { %49 = dma.hbm_to_vmem [thread:$0]  %s1552_s2, 1024, %s1414_s22, [#allocation6], %s1339_s30, %s1339_s30, %s1340_s6  }
  0x44   :  { %s1343_s1 = smov [#allocation10]   ;;  %s1285_s20 = scalar_lea.hbm %s1554_s4, 1024 }
  0x45   :  { %s67_s17 = sshll.u32 %s1343_s1, 4  ;;  %p1286_p4 = scmp.ne.s32.totalorder %s1554_s4, %s1285_s20  ;;  %s68_s17 = int_to_ptr.vmem [resolvable:$true] %s67_s17 }
  0x46   :  { %p1289_p5 = scmp.lt.u32.totalorder %s1285_s20, %s1554_s4 }
  0x48   :  { %p1291_p6 = pnand %p1289_p5, %p1286_p4 }
  0x4a   :  { %1294 = shalt.err (!%p1291_p6)
}
  0x4b   :  { %s1295_s27 = scalar_lea.vmem %s68_s17, 1024  ;;  %p1300_p8 = scmp.lt.s32.totalorder %s68_s17, %s68_s17 }
  0x4c   :  { %p1296_p7 = scmp.ne.s32.totalorder %s68_s17, %s1295_s27  ;;  %p1301_p9 = scmp.lt.s32.totalorder %s1295_s27, %s1295_s27 }
  0x4e   :  { %p1302_p10 = por %p1301_p9, %p1300_p8 }
  0x50   :  { %p1303_p11 = pnand %p1302_p10, %p1296_p7 }
  0x52   :  { %1306 = shalt.err (!%p1303_p11)
}
  0x53   :  { %73 = dma.hbm_to_vmem [thread:$0]  %s1554_s4, 1024, %s68_s17, [#allocation9], %s1339_s30, %s1339_s30, %s1340_s6  }
  0x54   :  { %1329 = dma.done.wait [#allocation3], 512  }
  0x55   :  { %1330 = vsyncadd [#allocation3], 4294966784 }
  0x56   :  { %1331 = dma.done.wait [#allocation6], 1536  }
  0x57   :  { %1332 = vsyncadd [#allocation6], 4294965760 }
  0x58   :  { %1333 = dma.done.wait [#allocation9], 2048  }
  0x59   :  { %1334 = vsyncadd [#allocation9], 4294965248  ;;  %v1133_v0 = vld [vmem:[#allocation7] sm:$0xff]   ;;  %v1134_v1 = vld [vmem:[#allocation7 + $0x8] sm:$0xff]   ;;  %vm283_vm0 = vcmask 523264   ;;  %s1344_s4 = smov [#allocation11]  }
  0x5a   :  { %1003 = vmatprep.subr.bf16.mxu0 %v1133_v0  ;;  %v1135_v2 = vld [vmem:[#allocation7 + $0x10] sm:$0xff]   ;;  %v1136_v3 = vld [vmem:[#allocation7 + $0x18] sm:$0xff]   ;;  %v1141_v4 = vld [vmem:[#allocation5] sm:$0xff]   ;;  %s885_s30 = sshll.u32 %s1344_s4, 4  ;;  %s886_s30 = int_to_ptr.vmem [resolvable:$true] %s885_s30 }
  0x5b   :  { %1004 = vmatpush3.bf16.msra.mxu0 %v1133_v0  ;;  %1019 = vmatprep.mubr.bf16.mxu0 %v1141_v4  ;;  %v1137_v5 = vld [vmem:[#allocation7 + $0x20] sm:$0xff]   ;;  %v1138_v6 = vld [vmem:[#allocation7 + $0x28] sm:$0xff]   ;;  %v1139_v7 = vld [vmem:[#allocation7 + $0x30] sm:$0xff]   ;;  %s1307_s6 = scalar_lea.vmem %s886_s30, 1024  ;;  %p1312_p13 = scmp.lt.s32.totalorder %s886_s30, %s886_s30 }
  0x5c   :  { %1005 = vmatprep.subr.bf16.mxu0 %v1134_v1  ;;  %v1140_v8 = vld [vmem:[#allocation7 + $0x38] sm:$0xff]   ;;  %v1142_v9 = vld [vmem:[#allocation5 + $0x8] sm:$0xff]   ;;  %v1143_v10 = vld [vmem:[#allocation5 + $0x10] sm:$0xff]   ;;  %p1308_p12 = scmp.ne.s32.totalorder %s886_s30, %s1307_s6  ;;  %p1313_p0 = scmp.lt.s32.totalorder %s1307_s6, %s1307_s6 }
  0x5d   :  { %v1144_v11 = vld [vmem:[#allocation5 + $0x18] sm:$0xff]   ;;  %v1466_v12 = vld [vmem:[#allocation2] sm:$0xff]   ;;  %v1472_v26 = vld [vmem:[#allocation2 + $0x8] sm:$0xff]  }
  0x5e   :  { %1035 = vmatprep.mubr.msk.bf16.mxu1 %vm283_vm0, %v1466_v12  ;;  %v1149_v25 = vld [vmem:[#allocation8] sm:$0xff]   ;;  %v1474_v27 = vld [vmem:[#allocation2 + $0x10] sm:$0xff]   ;;  %v1150_v28 = vld [vmem:[#allocation8 + $0x8] sm:$0xff]   ;;  %p1314_p1 = por %p1313_p0, %p1312_p13 }
  0x5f   :  { %1006 = vmatpush3.bf16.msra.mxu0 %v1134_v1  ;;  %v1151_v29 = vld [vmem:[#allocation8 + $0x10] sm:$0xff]   ;;  %v1480_v30 = vld [vmem:[#allocation2 + $0x18] sm:$0xff]   ;;  %v1153_v32 = vld [vmem:[#allocation8 + $0x20] sm:$0xff]  }
  0x60   :  { %1007 = vmatprep.subr.bf16.mxu0 %v1135_v2  ;;  %v1152_v31 = vld [vmem:[#allocation8 + $0x18] sm:$0xff]   ;;  %v1154_v33 = vld [vmem:[#allocation8 + $0x28] sm:$0xff]   ;;  %v1155_v34 = vld [vmem:[#allocation8 + $0x30] sm:$0xff]   ;;  %p1315_p2 = pnand %p1314_p1, %p1308_p12 }
  0x61   :  { %v1156_v35 = vld [vmem:[#allocation8 + $0x38] sm:$0xff]   ;;  %v1157_v4 = vld [vmem:[#allocation10] sm:$0xff]  }
  0x63   :  { %1008 = vmatpush3.bf16.msra.mxu0 %v1135_v2 }
  0x64   :  { %1009 = vmatprep.subr.bf16.mxu0 %v1136_v3 }
  0x67   :  { %1010 = vmatpush3.bf16.msra.mxu0 %v1136_v3 }
  0x68   :  { %1011 = vmatprep.subr.bf16.mxu0 %v1137_v5 }
  0x6b   :  { %1012 = vmatpush3.bf16.msra.mxu0 %v1137_v5  ;;  %v1158_v5 = vld [vmem:[#allocation10 + $0x8] sm:$0xff]  }
  0x6c   :  { %1013 = vmatprep.subr.bf16.mxu0 %v1138_v6 }
  0x6f   :  { %1014 = vmatpush3.bf16.msra.mxu0 %v1138_v6  ;;  %v1159_v6 = vld [vmem:[#allocation10 + $0x10] sm:$0xff]  }
  0x70   :  { %1015 = vmatprep.subr.bf16.mxu0 %v1139_v7 }
  0x73   :  { %1016 = vmatpush3.bf16.msra.mxu0 %v1139_v7  ;;  %v1160_v7 = vld [vmem:[#allocation10 + $0x18] sm:$0xff]  }
  0x74   :  { %1017 = vmatprep.subr.bf16.mxu0 %v1140_v8 }
  0x77   :  { %1018 = vmatpush3.bf16.msra.mxu0 %v1140_v8  ;;  %v1161_v8 = vld [vmem:[#allocation10 + $0x20] sm:$0xff]  }
  0x7a   :  { %1020 = vmatmul.mubr.bf16.vlgmr.msra.gmra.mrb[0].mxu0 %v1142_v9  ;;  %v1162_v9 = vld [vmem:[#allocation10 + $0x28] sm:$0xff]  }
  0x7b   :  { %1023 = vmatprep.mubr.bf16.mxu0 %v1143_v10  ;;  %v1163_v10 = vld [vmem:[#allocation10 + $0x30] sm:$0xff]  }
  0x82   :  { %1024 = vmatmul.mubr.bf16.gmra.mrb[4].mxu0 %v1144_v11  ;;  %v1164_v11 = vld [vmem:[#allocation10 + $0x38] sm:$0xff]  }
  0x83   :  { %1075 = vmatprep.mubr.msk.bf16.mxu0 %vm283_vm0, %v1466_v12 }
 0x14d   :  { %v1021_v13 = vpop.f32.mrb[0].mxu0 }
 0x14e   :  { %v228_v14 = vpop.f32.mrb[1].mxu0 }
 0x14f   :  { %v1022_v15 = vpop.f32.mrb[2].mxu0 }
 0x150   :  { %v260_v16 = vpack.c.bf16 %v1022_v15, %v1021_v13  ;;  %v231_v17 = vpop.f32.mrb[3].mxu0 }
 0x151   :  { %v259_v18 = vpack.c.bf16 %v231_v17, %v228_v14 }
 0x153   :  { %1027 = vmatprep.subr.bf16.mxu1 %v259_v18 }
 0x154   :  { %1028 = vmatpush3.bf16.msra.mxu1 %v259_v18 }
 0x155   :  { %v1025_v19 = vpop.f32.mrb[4].mxu0  ;;  %1029 = vmatprep.subr.bf16.mxu1 %v260_v16 }
 0x156   :  { %v244_v20 = vpop.f32.mrb[5].mxu0 }
 0x157   :  { %v1026_v21 = vpop.f32.mrb[6].mxu0 }
 0x158   :  { %v262_v22 = vpack.c.bf16 %v1026_v21, %v1025_v19  ;;  %v247_v23 = vpop.f32.mrb[7].mxu0  ;;  %1030 = vmatpush3.bf16.msra.mxu1 %v260_v16 }
 0x159   :  { %v261_v24 = vpack.c.bf16 %v247_v23, %v244_v20 }
 0x15b   :  { %1031 = vmatprep.subr.bf16.mxu1 %v261_v24 }
 0x15c   :  { %1032 = vmatpush3.bf16.msra.mxu1 %v261_v24 }
 0x15d   :  { %1033 = vmatprep.subr.bf16.mxu1 %v262_v22 }
 0x160   :  { %1034 = vmatpush3.bf16.msra.mxu1 %v262_v22 }
 0x161   :  { %1043 = vmatprep.subr.bf16.mxu1 %v1149_v25 }
 0x163   :  { %1036 = vmatmul.mubr.msk.bf16.vlgmr.msra.gmra.mrb[0].mxu1 %vm283_vm0, %v1472_v26 }
 0x164   :  { %1039 = vmatprep.mubr.msk.bf16.mxu1 %vm283_vm0, %v1474_v27  ;;  %1044 = vmatpush3.bf16.msra.mxu1 %v1149_v25 }
 0x165   :  { %1045 = vmatprep.subr.bf16.mxu1 %v1150_v28 }
 0x168   :  { %1046 = vmatpush3.bf16.msra.mxu1 %v1150_v28 }
 0x169   :  { %1047 = vmatprep.subr.bf16.mxu1 %v1151_v29 }
 0x16b   :  { %1040 = vmatmul.mubr.msk.bf16.gmra.mrb[4].mxu1 %vm283_vm0, %v1480_v30 }
 0x16c   :  { %1048 = vmatpush3.bf16.msra.mxu1 %v1151_v29 }
 0x16d   :  { %1049 = vmatprep.subr.bf16.mxu1 %v1152_v31 }
 0x170   :  { %1050 = vmatpush3.bf16.msra.mxu1 %v1152_v31 }
 0x171   :  { %1051 = vmatprep.subr.bf16.mxu1 %v1153_v32 }
 0x174   :  { %1052 = vmatpush3.bf16.msra.mxu1 %v1153_v32 }
 0x175   :  { %1053 = vmatprep.subr.bf16.mxu1 %v1154_v33 }
 0x178   :  { %1054 = vmatpush3.bf16.msra.mxu1 %v1154_v33 }
 0x179   :  { %1055 = vmatprep.subr.bf16.mxu1 %v1155_v34 }
 0x17c   :  { %1056 = vmatpush3.bf16.msra.mxu1 %v1155_v34 }
 0x17d   :  { %1057 = vmatprep.subr.bf16.mxu1 %v1156_v35 }
 0x180   :  { %1058 = vmatpush3.bf16.msra.mxu1 %v1156_v35 }
 0x236   :  { %v1037_v36 = vpop.f32.mrb[0].mxu1 }
 0x237   :  { %v330_v37 = vpop.f32.mrb[1].mxu1  ;;  %v363_v39 = vmax.f32 %v1037_v36, 0.0 }
 0x238   :  { %v1038_v38 = vpop.f32.mrb[2].mxu1  ;;  %v361_v42 = vmax.f32 %v330_v37, 0.0 }
 0x239   :  { %v364_v40 = vmax.f32 %v1038_v38, 0.0  ;;  %v333_v41 = vpop.f32.mrb[3].mxu1 }
 0x23a   :  { %v362_v43 = vmax.f32 %v333_v41, 0.0 }
 0x23b   :  { %v370_v44 = vpack.c.bf16 %v364_v40, %v363_v39 }
 0x23c   :  { %v369_v45 = vpack.c.bf16 %v362_v43, %v361_v42 }
 0x23e   :  { %v1041_v46 = vpop.f32.mrb[4].mxu1  ;;  %1059 = vmatprep.mubr.bf16.mxu1 %v369_v45 }
 0x23f   :  { %v346_v47 = vpop.f32.mrb[5].mxu1  ;;  %1060 = vmatmul.mubr.bf16.vlgmr.msra.gmra.mrb[8].mxu1 %v370_v44  ;;  %v367_v49 = vmax.f32 %v1041_v46, 0.0 }
 0x240   :  { %v1042_v48 = vpop.f32.mrb[6].mxu1  ;;  %v365_v52 = vmax.f32 %v346_v47, 0.0  ;;  %v781_v47 = vlaneseq }
 0x241   :  { %v368_v50 = vmax.f32 %v1042_v48, 0.0  ;;  %v349_v51 = vpop.f32.mrb[7].mxu1 }
 0x242   :  { %v366_v53 = vmax.f32 %v349_v51, 0.0  ;;  %v782_v48 = vand.u32 127, %v781_v47 }
 0x243   :  { %v372_v54 = vpack.c.bf16 %v368_v50, %v367_v49 }
 0x244   :  { %v371_v55 = vpack.c.bf16 %v366_v53, %v365_v52  ;;  %vm783_vm1 = vcmp.lt.s32.totalorder %v782_v48, 8 }
 0x246   :  { %1063 = vmatprep.mubr.bf16.mxu1 %v371_v55 }
 0x247   :  { %1064 = vmatmul.mubr.bf16.gmra.mrb[12].mxu1 %v372_v54 }
 0x248   :  { %1115 = vmatprep.mubr.msk.bf16.mxu1 %vm283_vm0, %v1466_v12 }
 0x312   :  { %v1061_v56 = vpop.f32.mrb[8].mxu1 }
 0x313   :  { %v471_v57 = vpop.f32.mrb[9].mxu1 }
 0x314   :  { %v1062_v58 = vpop.f32.mrb[10].mxu1 }
 0x315   :  { %v503_v59 = vpack.c.bf16 %v1062_v58, %v1061_v56  ;;  %v474_v60 = vpop.f32.mrb[11].mxu1 }
 0x316   :  { %v502_v61 = vpack.c.bf16 %v474_v60, %v471_v57 }
 0x318   :  { %1067 = vmatprep.subr.bf16.mxu0 %v502_v61 }
 0x319   :  { %1068 = vmatpush3.bf16.msra.mxu0 %v502_v61 }
 0x31a   :  { %v1065_v62 = vpop.f32.mrb[12].mxu1  ;;  %1069 = vmatprep.subr.bf16.mxu0 %v503_v59 }
 0x31b   :  { %v487_v63 = vpop.f32.mrb[13].mxu1 }
 0x31c   :  { %v1066_v0 = vpop.f32.mrb[14].mxu1 }
 0x31d   :  { %v505_v1 = vpack.c.bf16 %v1066_v0, %v1065_v62  ;;  %v490_v2 = vpop.f32.mrb[15].mxu1  ;;  %1070 = vmatpush3.bf16.msra.mxu0 %v503_v59 }
 0x31e   :  { %v504_v3 = vpack.c.bf16 %v490_v2, %v487_v63 }
 0x320   :  { %1071 = vmatprep.subr.bf16.mxu0 %v504_v3 }
 0x321   :  { %1072 = vmatpush3.bf16.msra.mxu0 %v504_v3 }
 0x322   :  { %1073 = vmatprep.subr.bf16.mxu0 %v505_v1 }
 0x325   :  { %1074 = vmatpush3.bf16.msra.mxu0 %v505_v1 }
 0x326   :  { %1083 = vmatprep.subr.bf16.mxu0 %v1157_v4 }
 0x328   :  { %1076 = vmatmul.mubr.msk.bf16.vlgmr.msra.gmra.mrb[8].mxu0 %vm283_vm0, %v1472_v26 }
 0x329   :  { %1079 = vmatprep.mubr.msk.bf16.mxu0 %vm283_vm0, %v1474_v27  ;;  %1084 = vmatpush3.bf16.msra.mxu0 %v1157_v4 }
 0x32a   :  { %1085 = vmatprep.subr.bf16.mxu0 %v1158_v5 }
 0x32d   :  { %1086 = vmatpush3.bf16.msra.mxu0 %v1158_v5 }
 0x32e   :  { %1087 = vmatprep.subr.bf16.mxu0 %v1159_v6 }
 0x330   :  { %1080 = vmatmul.mubr.msk.bf16.gmra.mrb[12].mxu0 %vm283_vm0, %v1480_v30 }
 0x331   :  { %1088 = vmatpush3.bf16.msra.mxu0 %v1159_v6 }
 0x332   :  { %1089 = vmatprep.subr.bf16.mxu0 %v1160_v7 }
 0x335   :  { %1090 = vmatpush3.bf16.msra.mxu0 %v1160_v7 }
 0x336   :  { %1091 = vmatprep.subr.bf16.mxu0 %v1161_v8 }
 0x339   :  { %1092 = vmatpush3.bf16.msra.mxu0 %v1161_v8 }
 0x33a   :  { %1093 = vmatprep.subr.bf16.mxu0 %v1162_v9 }
 0x33d   :  { %1094 = vmatpush3.bf16.msra.mxu0 %v1162_v9 }
 0x33e   :  { %1095 = vmatprep.subr.bf16.mxu0 %v1163_v10 }
 0x341   :  { %1096 = vmatpush3.bf16.msra.mxu0 %v1163_v10 }
 0x342   :  { %1097 = vmatprep.subr.bf16.mxu0 %v1164_v11 }
 0x345   :  { %1098 = vmatpush3.bf16.msra.mxu0 %v1164_v11 }
 0x3fb   :  { %v1077_v12 = vpop.f32.mrb[8].mxu0 }
 0x3fc   :  { %v540_v13 = vpop.f32.mrb[9].mxu0  ;;  %v573_v15 = vmax.f32 %v1077_v12, 0.0 }
 0x3fd   :  { %v1078_v14 = vpop.f32.mrb[10].mxu0  ;;  %v571_v18 = vmax.f32 %v540_v13, 0.0 }
 0x3fe   :  { %v574_v16 = vmax.f32 %v1078_v14, 0.0  ;;  %v543_v17 = vpop.f32.mrb[11].mxu0 }
 0x3ff   :  { %v572_v19 = vmax.f32 %v543_v17, 0.0 }
 0x400   :  { %v580_v20 = vpack.c.bf16 %v574_v16, %v573_v15 }
 0x401   :  { %v579_v21 = vpack.c.bf16 %v572_v19, %v571_v18 }
 0x403   :  { %v1081_v22 = vpop.f32.mrb[12].mxu0  ;;  %1099 = vmatprep.mubr.bf16.mxu0 %v579_v21 }
 0x404   :  { %v556_v23 = vpop.f32.mrb[13].mxu0  ;;  %1100 = vmatmul.mubr.bf16.vlgmr.msra.gmra.mrb[16].mxu0 %v580_v20  ;;  %v577_v25 = vmax.f32 %v1081_v22, 0.0 }
 0x405   :  { %v1082_v24 = vpop.f32.mrb[14].mxu0  ;;  %v575_v31 = vmax.f32 %v556_v23, 0.0 }
 0x406   :  { %v578_v28 = vmax.f32 %v1082_v24, 0.0  ;;  %v559_v29 = vpop.f32.mrb[15].mxu0 }
 0x407   :  { %v576_v32 = vmax.f32 %v559_v29, 0.0 }
 0x408   :  { %v582_v33 = vpack.c.bf16 %v578_v28, %v577_v25 }
 0x409   :  { %v581_v34 = vpack.c.bf16 %v576_v32, %v575_v31 }
 0x40b   :  { %1103 = vmatprep.mubr.bf16.mxu0 %v581_v34 }
 0x40c   :  { %1104 = vmatmul.mubr.bf16.gmra.mrb[20].mxu0 %v582_v33 }
 0x4d7   :  { %v1101_v35 = vpop.f32.mrb[16].mxu0 }
 0x4d8   :  { %v681_v36 = vpop.f32.mrb[17].mxu0 }
 0x4d9   :  { %v1102_v37 = vpop.f32.mrb[18].mxu0 }
 0x4da   :  { %v713_v38 = vpack.c.bf16 %v1102_v37, %v1101_v35  ;;  %v684_v39 = vpop.f32.mrb[19].mxu0 }
 0x4db   :  { %v712_v40 = vpack.c.bf16 %v684_v39, %v681_v36 }
 0x4dd   :  { %1107 = vmatprep.subr.bf16.mxu1 %v712_v40 }
 0x4de   :  { %1108 = vmatpush3.bf16.msra.mxu1 %v712_v40 }
 0x4df   :  { %v1105_v41 = vpop.f32.mrb[20].mxu0  ;;  %1109 = vmatprep.subr.bf16.mxu1 %v713_v38 }
 0x4e0   :  { %v697_v42 = vpop.f32.mrb[21].mxu0 }
 0x4e1   :  { %v1106_v43 = vpop.f32.mrb[22].mxu0 }
 0x4e2   :  { %v715_v44 = vpack.c.bf16 %v1106_v43, %v1105_v41  ;;  %v700_v45 = vpop.f32.mrb[23].mxu0  ;;  %1110 = vmatpush3.bf16.msra.mxu1 %v713_v38 }
 0x4e3   :  { %v714_v46 = vpack.c.bf16 %v700_v45, %v697_v42 }
 0x4e5   :  { %1111 = vmatprep.subr.bf16.mxu1 %v714_v46 }
 0x4e6   :  { %1112 = vmatpush3.bf16.msra.mxu1 %v714_v46 }
 0x4e7   :  { %1113 = vmatprep.subr.bf16.mxu1 %v715_v44 }
 0x4ea   :  { %1114 = vmatpush3.bf16.msra.mxu1 %v715_v44 }
 0x4ed   :  { %1116 = vmatmul.mubr.msk.bf16.vlgmr.msra.gmra.mrb[16].mxu1 %vm283_vm0, %v1472_v26 }
 0x4ee   :  { %1119 = vmatprep.mubr.msk.bf16.mxu1 %vm283_vm0, %v1474_v27 }
 0x4f5   :  { %1120 = vmatmul.mubr.msk.bf16.gmra.mrb[20].mxu1 %vm283_vm0, %v1480_v30 }
 0x5c0   :  { %v1117_v49 = vpop.f32.mrb[16].mxu1 }
 0x5c1   :  { %v750_v50 = vpop.f32.mrb[17].mxu1  ;;  %v786_v51 = vsel %vm783_vm1, %v1117_v49, -1e+30 }
 0x5c2   :  { %796 = vmax.xlane.f32.xlu1 %v786_v51  ;;  %v1118_v52 = vpop.f32.mrb[18].mxu1  ;;  %v784_v53 = vsel %vm783_vm1, %v750_v50, -1e+30 }
 0x5c3   :  { %792 = vmax.xlane.f32.xlu0 %v784_v53  ;;  %v753_v54 = vpop.f32.mrb[19].mxu1  ;;  %v787_v26 = vsel %vm783_vm1, %v1118_v52, -1e+30 }
 0x5c4   :  { %v785_v27 = vsel %vm783_vm1, %v753_v54, -1e+30 }
 0x5c6   :  { %798 = vmax.xlane.f32.xlu1 %v787_v26 }
 0x5c7   :  { %794 = vmax.xlane.f32.xlu0 %v785_v27 }
 0x5c8   :  { %v1121_v30 = vpop.f32.mrb[20].mxu1 }
 0x5c9   :  { %v766_v55 = vpop.f32.mrb[21].mxu1  ;;  %v790_v60 = vsel %vm783_vm1, %v1121_v30, -1e+30 }
 0x5ca   :  { %v1122_v56 = vpop.f32.mrb[22].mxu1  ;;  %v788_v57 = vsel %vm783_vm1, %v766_v55, -1e+30 }
 0x5cb   :  { %800 = vmax.xlane.f32.xlu0 %v788_v57  ;;  %v769_v58 = vpop.f32.mrb[23].mxu1  ;;  %v791_v61 = vsel %vm783_vm1, %v1122_v56, -1e+30 }
 0x5cc   :  { %v789_v59 = vsel %vm783_vm1, %v769_v58, -1e+30 }
 0x5cd   :  { %802 = vmax.xlane.f32.xlu1 %v789_v59 }
 0x5cf   :  { %804 = vmax.xlane.f32.xlu0 %v790_v60 }
 0x5d1   :  { %806 = vmax.xlane.f32.xlu1 %v791_v61 }
 0x64f   :  { %v797_v62 = vpop.xlane.xlu1 %796 }
 0x650   :  { %v1506_v63 = vsub.f32 %v786_v51, %v797_v62  ;;  %v793_v0 = vpop.xlane.xlu0 %792 }
 0x651   :  { %v1508_v1 = vsub.f32 %v784_v53, %v793_v0 }
 0x652   :  { %v820_v2 = vmul.f32 1.442695, %v1506_v63 }
 0x653   :  { %v816_v3 = vmul.f32 1.442695, %v1508_v1  ;;  %v799_v4 = vpop.xlane.xlu1 %798 }
 0x654   :  { %1165 = vpow2.f32 %v820_v2  ;;  %v1512_v5 = vsub.f32 %v787_v26, %v799_v4  ;;  %v795_v6 = vpop.xlane.xlu0 %794 }
 0x655   :  { %v1514_v7 = vsub.f32 %v785_v27, %v795_v6  ;;  %1167 = vpow2.f32 %v816_v3 }
 0x656   :  { %v822_v8 = vmul.f32 1.442695, %v1512_v5 }
 0x657   :  { %v818_v9 = vmul.f32 1.442695, %v1514_v7 }
 0x658   :  { %1169 = vpow2.f32 %v822_v8  ;;  %v801_v10 = vpop.xlane.xlu0 %800 }
 0x659   :  { %v1518_v11 = vsub.f32 %v788_v57, %v801_v10  ;;  %1171 = vpow2.f32 %v818_v9 }
 0x65a   :  { %v803_v12 = vpop.xlane.xlu1 %802 }
 0x65b   :  { %v824_v13 = vmul.f32 1.442695, %v1518_v11  ;;  %v1521_v14 = vsub.f32 %v789_v59, %v803_v12 }
 0x65c   :  { %v805_v15 = vpop.xlane.xlu0 %804 }
 0x65d   :  { %1173 = vpow2.f32 %v824_v13  ;;  %v826_v16 = vmul.f32 1.442695, %v1521_v14  ;;  %v1524_v17 = vsub.f32 %v790_v60, %v805_v15 }
 0x65e   :  { %v1166_v18 = vpop.eup %1165  ;;  %v807_v19 = vpop.xlane.xlu1 %806 }
 0x65f   :  { %1175 = vpow2.f32 %v826_v16  ;;  %v828_v20 = vmul.f32 1.442695, %v1524_v17  ;;  %v1527_v21 = vsub.f32 %v791_v61, %v807_v19  ;;  %836 = vadd.xlane.f32.xlu0 %v1166_v18  ;;  %v1168_v22 = vpop.eup %1167 }
 0x661   :  { %1177 = vpow2.f32 %v828_v20  ;;  %v830_v23 = vmul.f32 1.442695, %v1527_v21 }
 0x662   :  { %v1170_v24 = vpop.eup %1169 }
 0x663   :  { %1179 = vpow2.f32 %v830_v23  ;;  %832 = vadd.xlane.f32.xlu0 %v1168_v22  ;;  %838 = vadd.xlane.f32.xlu1 %v1170_v24  ;;  %v1172_v25 = vpop.eup %1171 }
 0x667   :  { %v1174_v28 = vpop.eup %1173  ;;  %834 = vadd.xlane.f32.xlu1 %v1172_v25 }
 0x668   :  { %840 = vadd.xlane.f32.xlu0 %v1174_v28 }
 0x669   :  { %v1176_v29 = vpop.eup %1175 }
 0x66b   :  { %v1178_v31 = vpop.eup %1177  ;;  %842 = vadd.xlane.f32.xlu1 %v1176_v29 }
 0x66c   :  { %844 = vadd.xlane.f32.xlu0 %v1178_v31 }
 0x66d   :  { %v1180_v32 = vpop.eup %1179 }
 0x66f   :  { %846 = vadd.xlane.f32.xlu1 %v1180_v32 }
 0x6ec   :  { %v837_v33 = vpop.xlane.xlu0 %836 }
 0x6ed   :  { %1181 = vlog2.f32 %v837_v33 }
 0x6f0   :  { %v833_v34 = vpop.xlane.xlu0 %832  ;;  %v839_v35 = vpop.xlane.xlu1 %838 }
 0x6f1   :  { %1183 = vlog2.f32 %v833_v34 }
 0x6f2   :  { %1185 = vlog2.f32 %v839_v35 }
 0x6f4   :  { %v835_v36 = vpop.xlane.xlu1 %834 }
 0x6f5   :  { %1187 = vlog2.f32 %v835_v36  ;;  %v841_v37 = vpop.xlane.xlu0 %840 }
 0x6f6   :  { %1189 = vlog2.f32 %v841_v37 }
 0x6f7   :  { %v1182_v38 = vpop.eup %1181 }
 0x6f8   :  { %v853_v39 = vmul.f32 0.6931472, %v1182_v38  ;;  %v843_v40 = vpop.xlane.xlu1 %842 }
 0x6f9   :  { %1191 = vlog2.f32 %v843_v40  ;;  %v845_v41 = vpop.xlane.xlu0 %844 }
 0x6fa   :  { %v866_v42 = vsub.f32 %v1506_v63, %v853_v39  ;;  %1193 = vlog2.f32 %v845_v41 }
 0x6fb   :  { %v1184_v43 = vpop.eup %1183 }
 0x6fc   :  { %v1186_v44 = vpop.eup %1185  ;;  %874 = vst [vmem:[#allocation11 + $0x10] sm:$0xff] %v866_v42  ;;  %v849_v45 = vmul.f32 0.6931472, %v1184_v43  ;;  %v847_v46 = vpop.xlane.xlu1 %846 }
 0x6fd   :  { %v855_v47 = vmul.f32 0.6931472, %v1186_v44  ;;  %1195 = vlog2.f32 %v847_v46 }
 0x6fe   :  { %v864_v48 = vsub.f32 %v1508_v1, %v849_v45 }
 0x6ff   :  { %v1188_v49 = vpop.eup %1187  ;;  %v867_v50 = vsub.f32 %v1512_v5, %v855_v47 }
 0x700   :  { %v1190_v51 = vpop.eup %1189  ;;  %872 = vst [vmem:[#allocation11] sm:$0xff] %v864_v48  ;;  %v851_v52 = vmul.f32 0.6931472, %v1188_v49 }
 0x701   :  { %875 = vst [vmem:[#allocation11 + $0x18] sm:$0xff] %v867_v50  ;;  %v857_v53 = vmul.f32 0.6931472, %v1190_v51 }
 0x702   :  { %v865_v54 = vsub.f32 %v1514_v7, %v851_v52 }
 0x703   :  { %v1192_v26 = vpop.eup %1191  ;;  %v868_v27 = vsub.f32 %v1518_v11, %v857_v53 }
 0x704   :  { %v1194_v30 = vpop.eup %1193  ;;  %873 = vst [vmem:[#allocation11 + $0x8] sm:$0xff] %v865_v54  ;;  %v859_v55 = vmul.f32 0.6931472, %v1192_v26 }
 0x705   :  { %876 = vst [vmem:[#allocation11 + $0x20] sm:$0xff] %v868_v27  ;;  %v861_v56 = vmul.f32 0.6931472, %v1194_v30 }
 0x706   :  { %v869_v57 = vsub.f32 %v1521_v14, %v859_v55 }
 0x707   :  { %v1196_v58 = vpop.eup %1195  ;;  %v870_v59 = vsub.f32 %v1524_v17, %v861_v56 }
 0x708   :  { %877 = vst [vmem:[#allocation11 + $0x28] sm:$0xff] %v869_v57  ;;  %v863_v60 = vmul.f32 0.6931472, %v1196_v58 }
 0x709   :  { %878 = vst [vmem:[#allocation11 + $0x30] sm:$0xff] %v870_v59 }
 0x70a   :  { %v871_v61 = vsub.f32 %v1527_v21, %v863_v60 }
 0x70c   :  { %879 = vst [vmem:[#allocation11 + $0x38] sm:$0xff] %v871_v61 }
 0x70d   :  { %1318 = shalt.err (!%p1315_p2)
}
 0x70e   :  { %s1319_s3 = scalar_lea.hbm %s1555_s5, 1024 }
 0x70f   :  { %p1320_p3 = scmp.ne.s32.totalorder %s1555_s5, %s1319_s3  ;;  %p1323_p4 = scmp.lt.u32.totalorder %s1319_s3, %s1555_s5 }
 0x711   :  { %p1325_p5 = pnand %p1323_p4, %p1320_p3 }
 0x713   :  { %1328 = shalt.err (!%p1325_p5)
}
 0x714   :  { %s1345_s10 = smov 128   ;;  %s1346_s11 = smov 8  }
 0x715   :  { %891 = dma.vmem_to_hbm [thread:$0]  %s886_s30, 1024, %s1555_s5, [#allocation4], %s1345_s10, %s1345_s10, %s1346_s11  }
 0x716   :  { %1335 = dma.done.wait [#allocation4], 1024  }
 0x717   :  { %1336 = vsyncadd [#allocation4], 4294966272 }
 0x718   :  { %895 = vsyncpa [#allocation3], 1 }
 0x719   :  { %896 = vsyncpa [#allocation6], 1 }
 0x71a   :  { %897 = vsyncpa [#allocation9], 1 }
 0x71b   :  { %898 = vsyncpa [#allocation4], 1 }

</bundles_post_ra>
